<compile_context>
chip_gen: v5e
topology: v5e:2x2
jax: 0.10.0
libtpu: 0.0.40
codegen_flags: <defaults>
</compile_context>

<pallas_src>
import functools

import jax
import jax.numpy as jnp
from jax import lax
from jax.experimental import pallas as pl
from jax.experimental.pallas import tpu as pltpu


# --------------------------------------------------------------------------
# helpers
# --------------------------------------------------------------------------

def _pick_block(total, target, *, prefer_split=False):
    """Largest block <= target that divides `total` and is sublane (8) aligned
    unless it equals the full extent.  With prefer_split, prefer >=2 grid steps
    so the 'parallel' axis can be sharded across v7x's two TensorCores."""
    blk = min(target, total)
    while total % blk != 0 or (blk % 8 != 0 and blk != total):
        blk -= 1
    if prefer_split and blk == total and total % 2 == 0 and (total // 2) % 8 == 0:
        blk = total // 2
    return blk


# --------------------------------------------------------------------------
# Row-tiled linear kernel:  (T, Cin) @ (Cin, Cout) + b
#   - fused QKV projection (lane-dense 3C-wide output, full-depth C contraction)
#   - output projection (head-merge folded into the C-deep contraction)
# --------------------------------------------------------------------------

def _linear_kernel(x_ref, w_ref, b_ref, o_ref):
    acc = jnp.dot(x_ref[...], w_ref[...], preferred_element_type=jnp.float32)
    o_ref[...] = (acc + b_ref[...]).astype(o_ref.dtype)


def _linear(x2d, w, b, *, out_dtype, block_rows):
    T, Cin = x2d.shape
    Cout = w.shape[1]
    tm = _pick_block(T, block_rows, prefer_split=True)

    def call(single_buffer):
        def const_spec(shape):
            idx = lambda *_: (0,) * len(shape)
            if single_buffer:
                # grid-invariant operand: no double buffering (halves its VMEM)
                return pl.BlockSpec(shape, idx, pipeline_mode=pl.Buffered(1))
            return pl.BlockSpec(shape, idx)

        return pl.pallas_call(
            _linear_kernel,
            out_shape=jax.ShapeDtypeStruct((T, Cout), out_dtype),
            grid=(T // tm,),
            in_specs=[
                pl.BlockSpec((tm, Cin), lambda i: (i, 0)),
                const_spec(w.shape),
                const_spec(b.shape),
            ],
            out_specs=pl.BlockSpec((tm, Cout), lambda i: (i, 0)),
            compiler_params=pltpu.CompilerParams(
                dimension_semantics=("parallel",)),
        )(x2d, w, b)

    try:
        return call(True)
    except Exception:   # Pallas build without pipeline_mode / Buffered(1) support
        return call(False)


# --------------------------------------------------------------------------
# Flash attention kernel: grid (B*H, q-blocks, kv-blocks), online softmax with
# m/l/acc accumulators in VMEM scratch; 1/sqrt(hd) is pre-folded into q.
# --------------------------------------------------------------------------

def _flash_kernel(exact_recip, q_ref, k_ref, v_ref, o_ref, m_ref, l_ref, acc_ref):
    ki = pl.program_id(2)

    @pl.when(ki == 0)
    def _():
        m_ref[...] = jnp.full(m_ref.shape, -jnp.inf, jnp.float32)
        l_ref[...] = jnp.zeros(l_ref.shape, jnp.float32)
        acc_ref[...] = jnp.zeros(acc_ref.shape, jnp.float32)

    # scores (tq, tk) in f32; softmax scale already folded into the q weights
    s = lax.dot_general(q_ref[...], k_ref[...],
                        (((1,), (1,)), ((), ())),
                        preferred_element_type=jnp.float32)

    m_prev = m_ref[...]
    m_new = jnp.maximum(m_prev, jnp.max(s, axis=-1, keepdims=True))
    alpha = jnp.exp(m_prev - m_new)
    p = jnp.exp(s - m_new)

    l_ref[...] = alpha * l_ref[...] + jnp.sum(p, axis=-1, keepdims=True)
    acc_ref[...] = alpha * acc_ref[...] + jnp.dot(
        p.astype(v_ref.dtype), v_ref[...], preferred_element_type=jnp.float32)
    m_ref[...] = m_new

    @pl.when(ki == pl.num_programs(2) - 1)
    def _():
        if exact_recip:
            inv = 1.0 / l_ref[...]
        else:
            inv = pl.reciprocal(l_ref[...], approx=True)   # EUP slot, ~free
        o_ref[...] = (acc_ref[...] * inv).astype(o_ref.dtype)


def _flash_attention(q, k, v, *, block_q, block_k, exact_recip, out_dtype):
    BH, N, hd = q.shape
    tq = _pick_block(N, block_q)
    tk = _pick_block(N, block_k)
    kern = functools.partial(_flash_kernel, exact_recip)
    return pl.pallas_call(
        kern,
        out_shape=jax.ShapeDtypeStruct((BH, N, hd), out_dtype),
        grid=(BH, N // tq, N // tk),
        in_specs=[
            pl.BlockSpec((None, tq, hd), lambda z, qi, ki: (z, qi, 0)),
            pl.BlockSpec((None, tk, hd), lambda z, qi, ki: (z, ki, 0)),
            pl.BlockSpec((None, tk, hd), lambda z, qi, ki: (z, ki, 0)),
        ],
        out_specs=pl.BlockSpec((None, tq, hd), lambda z, qi, ki: (z, qi, 0)),
        scratch_shapes=[
            pltpu.VMEM((tq, 1), jnp.float32),    # running max m
            pltpu.VMEM((tq, 1), jnp.float32),    # running denom l
            pltpu.VMEM((tq, hd), jnp.float32),   # un-normalized output acc
        ],
        compiler_params=pltpu.CompilerParams(
            dimension_semantics=("parallel", "parallel", "arbitrary")),
    )(q, k, v)


# --------------------------------------------------------------------------
# wrapper
# --------------------------------------------------------------------------

def mha_pallas(x, qkv_w, qkv_b, proj_w, proj_b, *, num_heads,
               compute_dtype=jnp.bfloat16,
               block_rows=256, block_q=256, block_k=256):
    """Forward pass of MultiHeadAttention.

    x: (B, N, C); qkv_w: (3C, C); qkv_b: (3C,); proj_w: (C, C); proj_b: (C,)
    (PyTorch nn.Linear layout).  compute_dtype is the MXU operand dtype: bf16
    (default) is the fast path on v5e/v6e/v7x; float32 is the exact path.
    """
    B, N, C = x.shape
    H = num_heads
    hd = C // H
    assert hd * H == C, "embed_dim must be divisible by num_heads"
    f32 = jnp.float32
    out_dtype = x.dtype
    exact = jnp.dtype(compute_dtype) == jnp.dtype(jnp.float32)

    # --- weight re-packing, hoisted out of the kernels (runs once, plain XLA) ---
    # nn.Linear: y = x @ W.T + b.  Pre-transpose to (in, out), keep q/k/v fused
    # as one lane-dense (C, 3C) slab, and fold 1/sqrt(hd) into the q columns/bias.
    scale = float(hd) ** -0.5
    q_scale = jnp.concatenate([jnp.full((C,), scale, f32), jnp.ones((2 * C,), f32)])
    w_qkv = (qkv_w.T.astype(f32) * q_scale[None, :]).astype(compute_dtype)  # (C, 3C)
    b_qkv = (qkv_b.astype(f32) * q_scale).reshape(1, 3 * C)                 # f32
    w_o = proj_w.T.astype(compute_dtype)                                    # (C, C)
    b_o = proj_b.astype(f32).reshape(1, C)

    # --- 1) fused QKV projection: one full-depth, lane-dense matmul ---
    x2d = x.reshape(B * N, C).astype(compute_dtype)
    qkv2d = _linear(x2d, w_qkv, b_qkv, out_dtype=compute_dtype,
                    block_rows=block_rows)                                   # (B*N, 3C)

    # head split (plain XLA layout transform in the wrapper)
    qkv = qkv2d.reshape(B, N, 3, H, hd).transpose(2, 0, 3, 1, 4)
    qkv = qkv.reshape(3, B * H, N, hd)
    q, k, v = qkv[0], qkv[1], qkv[2]

    # --- 2) flash attention: online softmax over KV blocks, (B*H, Nq) parallel ---
    o = _flash_attention(q, k, v, block_q=block_q, block_k=block_k,
                         exact_recip=exact, out_dtype=compute_dtype)         # (B*H, N, hd)

    # --- 3) output projection: head-merge folded into one (B*N, C)@(C, C) matmul ---
    o2d = o.reshape(B, H, N, hd).transpose(0, 2, 1, 3).reshape(B * N, C)
    y2d = _linear(o2d, w_o, b_o, out_dtype=out_dtype, block_rows=block_rows)
    return y2d.reshape(B, N, C)


# --------------------------------------------------------------------------
# pure-JAX reference (PyTorch semantics)
# --------------------------------------------------------------------------

def mha_ref(x, qkv_w, qkv_b, proj_w, proj_b, *, num_heads):
    B, N, C = x.shape
    H = num_heads
    hd = C // H
    qkv = x @ qkv_w.T + qkv_b                                         # (B, N, 3C)
    qkv = qkv.reshape(B, N, 3, H, hd).transpose(2, 0, 3, 1, 4)        # (3, B, H, N, hd)
    q, k, v = qkv[0], qkv[1], qkv[2]
    attn = jnp.einsum('bhqd,bhkd->bhqk', q, k) * hd ** (-0.5)
    attn = jax.nn.softmax(attn, axis=-1)
    out = jnp.einsum('bhqk,bhkd->bhqd', attn, v)
    out = out.transpose(0, 2, 1, 3).reshape(B, N, C)
    return out @ proj_w.T + proj_b


# --------------------------------------------------------------------------
# main
# --------------------------------------------------------------------------

if __name__ == "__main__":
    B, N, C, H = 2, 8, 32, 4      # batch, seq, embed_dim, num_heads

    key = jax.random.PRNGKey(0)
    k1, k2, k3, k4, k5 = jax.random.split(key, 5)
    s = 0.05
    x = jax.random.normal(k1, (B, N, C), jnp.float32)
    qkv_w = s * jax.random.normal(k2, (3 * C, C), jnp.float32)
    qkv_b = s * jax.random.normal(k3, (3 * C,), jnp.float32)
    proj_w = s * jax.random.normal(k4, (C, C), jnp.float32)
    proj_b = s * jax.random.normal(k5, (C,), jnp.float32)

    ref = mha_ref(x, qkv_w, qkv_b, proj_w, proj_b, num_heads=H)

    # Exact f32 path (correctness check).
    out_f32 = mha_pallas(x, qkv_w, qkv_b, proj_w, proj_b,
                         num_heads=H, compute_dtype=jnp.float32)
    out_f32 = jax.block_until_ready(out_f32)
    assert out_f32.shape == (B, N, C)
    err = float(jnp.max(jnp.abs(out_f32 - ref)))
    assert jnp.allclose(out_f32, ref, atol=1e-4, rtol=1e-4), err

    # bf16 MXU fast path (default; recommended on v5e/v6e/v7x per review).
    out_bf16 = mha_pallas(x, qkv_w, qkv_b, proj_w, proj_b, num_heads=H)
    out_bf16 = jax.block_until_ready(out_bf16)
    assert out_bf16.shape == (B, N, C)
    err_bf16 = float(jnp.max(jnp.abs(out_bf16 - ref)))
    assert jnp.allclose(out_bf16, ref, atol=3e-2, rtol=3e-2), err_bf16

    print("KERNEL_OK")
</pallas_src>

<mosaic_0001>
module attributes {stable_mosaic.version = 11 : i64} {
  func.func @_linear_kernel(%arg0: i32, %arg1: memref<8x32xf32, #tpu.memory_space<vmem>>, %arg2: memref<32x96xf32, #tpu.memory_space<vmem>>, %arg3: memref<1x96xf32, #tpu.memory_space<vmem>>, %arg4: memref<8x96xf32, #tpu.memory_space<vmem>>) attributes {dimension_semantics = [#tpu.dimension_semantics<parallel>], iteration_bounds = array<i64: 2>, scalar_prefetch = 0 : i64, scratch_operands = 0 : i64, tpu.core_type = #tpu.core_type<tc>, window_params = [{transform_indices = @transform_0, window_bounds = array<i64: 8, 32>}, {pipeline_mode = #tpu.pipeline_mode<synchronous>, transform_indices = @transform_1, window_bounds = array<i64: 32, 96>}, {pipeline_mode = #tpu.pipeline_mode<synchronous>, transform_indices = @transform_2, window_bounds = array<i64: 1, 96>}, {transform_indices = @transform_3, window_bounds = array<i64: 8, 96>}]} {
    %c0 = arith.constant 0 : index
    %c0_0 = arith.constant 0 : index
    %0 = vector.load %arg1[%c0, %c0_0] : memref<8x32xf32, #tpu.memory_space<vmem>>, vector<8x32xf32>
    %c0_1 = arith.constant 0 : index
    %c0_2 = arith.constant 0 : index
    %1 = vector.load %arg2[%c0_1, %c0_2] : memref<32x96xf32, #tpu.memory_space<vmem>>, vector<32x96xf32>
    %cst = arith.constant dense<0.000000e+00> : vector<8x96xf32>
    %2 = tpu.matmul %0, %1, %cst {dimension_numbers = #tpu.dot_dimension_numbers<[1], [0], [0], [1], [0, 0, 1, 1], [], []>} : vector<8x32xf32>, vector<32x96xf32>, vector<8x96xf32> -> vector<8x96xf32>
    %c0_3 = arith.constant 0 : index
    %c0_4 = arith.constant 0 : index
    %3 = vector.load %arg3[%c0_3, %c0_4] : memref<1x96xf32, #tpu.memory_space<vmem>>, vector<1x96xf32>
    %4 = vector.broadcast %3 : vector<1x96xf32> to vector<8x96xf32>
    %5 = arith.addf %2, %4 : vector<8x96xf32>
    %c0_5 = arith.constant 0 : index
    %c0_6 = arith.constant 0 : index
    %6 = vector.load %arg4[%c0_5, %c0_6] : memref<8x96xf32, #tpu.memory_space<vmem>>, vector<8x96xf32>
    tpu.vector_store %arg4[%c0_5, %c0_6], %5 {strides = array<i32>} : memref<8x96xf32, #tpu.memory_space<vmem>>, vector<8x96xf32>,
    return
  }
  func.func @transform_0(%arg0: i32) -> (i32, i32) {
    %c0_i32 = arith.constant 0 : i32
    %c0_i32_0 = arith.constant 0 : i32
    return %arg0, %c0_i32 : i32, i32
  }
  func.func @transform_1(%arg0: i32) -> (i32, i32) {
    %c0_i32 = arith.constant 0 : i32
    %c0_i32_0 = arith.constant 0 : i32
    %c0_i32_1 = arith.constant 0 : i32
    return %c0_i32, %c0_i32_0 : i32, i32
  }
  func.func @transform_2(%arg0: i32) -> (i32, i32) {
    %c0_i32 = arith.constant 0 : i32
    %c0_i32_0 = arith.constant 0 : i32
    %c0_i32_1 = arith.constant 0 : i32
    return %c0_i32, %c0_i32_0 : i32, i32
  }
  func.func @transform_3(%arg0: i32) -> (i32, i32) {
    %c0_i32 = arith.constant 0 : i32
    %c0_i32_0 = arith.constant 0 : i32
    return %arg0, %c0_i32 : i32, i32
  }
}

module attributes {stable_mosaic.version = 11 : i64} {
  func.func @_linear_kernel(%arg0: i32, %arg1: memref<8x32xf32, #tpu.memory_space<vmem>>, %arg2: memref<32x96xf32, #tpu.memory_space<vmem>>, %arg3: memref<1x96xf32, #tpu.memory_space<vmem>>, %arg4: memref<8x96xf32, #tpu.memory_space<vmem>>) attributes {dimension_semantics = [#tpu.dimension_semantics<parallel>], iteration_bounds = array<i64: 2>, scalar_prefetch = 0 : i64, scratch_operands = 0 : i64, tpu.core_type = #tpu.core_type<tc>, window_params = [{transform_indices = @transform_0, window_bounds = array<i64: 8, 32>}, {pipeline_mode = #tpu.pipeline_mode<synchronous>, transform_indices = @transform_1, window_bounds = array<i64: 32, 96>}, {pipeline_mode = #tpu.pipeline_mode<synchronous>, transform_indices = @transform_2, window_bounds = array<i64: 1, 96>}, {transform_indices = @transform_3, window_bounds = array<i64: 8, 96>}]} {
    %c0 = arith.constant 0 : index
    %c0_0 = arith.constant 0 : index
    %0 = vector.load %arg1[%c0, %c0_0] : memref<8x32xf32, #tpu.memory_space<vmem>>, vector<8x32xf32>
    %c0_1 = arith.constant 0 : index
    %c0_2 = arith.constant 0 : index
    %1 = vector.load %arg2[%c0_1, %c0_2] : memref<32x96xf32, #tpu.memory_space<vmem>>, vector<32x96xf32>
    %cst = arith.constant dense<0.000000e+00> : vector<8x96xf32>
    %2 = tpu.matmul %0, %1, %cst {dimension_numbers = #tpu.dot_dimension_numbers<[1], [0], [0], [1], [0, 0, 1, 1], [], []>} : vector<8x32xf32>, vector<32x96xf32>, vector<8x96xf32> -> vector<8x96xf32>
    %c0_3 = arith.constant 0 : index
    %c0_4 = arith.constant 0 : index
    %3 = vector.load %arg3[%c0_3, %c0_4] : memref<1x96xf32, #tpu.memory_space<vmem>>, vector<1x96xf32>
    %4 = vector.broadcast %3 : vector<1x96xf32> to vector<8x96xf32>
    %5 = arith.addf %2, %4 : vector<8x96xf32>
    %c0_5 = arith.constant 0 : index
    %c0_6 = arith.constant 0 : index
    %6 = vector.load %arg4[%c0_5, %c0_6] : memref<8x96xf32, #tpu.memory_space<vmem>>, vector<8x96xf32>
    tpu.vector_store %arg4[%c0_5, %c0_6], %5 {strides = array<i32>} : memref<8x96xf32, #tpu.memory_space<vmem>>, vector<8x96xf32>,
    return
  }
  func.func @transform_0(%arg0: i32) -> (i32, i32) {
    %c0_i32 = arith.constant 0 : i32
    %c0_i32_0 = arith.constant 0 : i32
    return %arg0, %c0_i32 : i32, i32
  }
  func.func @transform_1(%arg0: i32) -> (i32, i32) {
    %c0_i32 = arith.constant 0 : i32
    %c0_i32_0 = arith.constant 0 : i32
    %c0_i32_1 = arith.constant 0 : i32
    return %c0_i32, %c0_i32_0 : i32, i32
  }
  func.func @transform_2(%arg0: i32) -> (i32, i32) {
    %c0_i32 = arith.constant 0 : i32
    %c0_i32_0 = arith.constant 0 : i32
    %c0_i32_1 = arith.constant 0 : i32
    return %c0_i32, %c0_i32_0 : i32, i32
  }
  func.func @transform_3(%arg0: i32) -> (i32, i32) {
    %c0_i32 = arith.constant 0 : i32
    %c0_i32_0 = arith.constant 0 : i32
    return %arg0, %c0_i32 : i32, i32
  }
}

</mosaic_0001>

<bundles_post_ra>
// kernel: tpu_custom_call.1
= control target key start
LH: loop header
LB: loop body
LE: loop exit
PB: predicated region body
PF: predicated region fallthrough
CT: control target
= control target key end

     0   :  { %8 = vsyncpa [#allocation3], 0  ;;  %s705_s0 = inlined_call_operand.hbm [shape: f32[16,32], index: 0, kind: input, shape index: {}]   ;;  %s706_s1 = inlined_call_operand.hbm [shape: f32[32,96], index: 1, kind: input, shape index: {}]   ;;  %s707_s2 = inlined_call_operand.vmem [shape: f32[1,96], index: 2, kind: input, shape index: {}]   ;;  %s708_s3 = inlined_call_operand.hbm [shape: f32[16,96], index: 3, kind: output, shape index: {}]  }
   0x1   :  { %10 = vsyncpa [#allocation3 + $0x1], 0 }
   0x2   :  { %11 = vsyncpa [#allocation6], 0 }
   0x3   :  { %12 = vsyncpa [#allocation4], 0 }
   0x4   :  { %14 = vsyncpa [#allocation4 + $0x1], 0  ;;  %s566_s12 = smov 0   ;;  %s568_s13 = smov 0  }
   0x5   :  { %s570_s14 = smov 0   ;;  %s572_s15 = smov 0  }
   0x6 LB: > { %s130_s18 = sshll.u32 %s706_s1, 4  ;;  %s590_s19 = sadd.s32 4294967295, %s541_s15   ;;  %s541_s15 = sphi %s572_s15, %s718_s15   ;;  %s537_s14 = sphi %s570_s14, %s717_s14   ;;  %s533_s13 = sphi %s568_s13, %s716_s13   ;;  %s529_s12 = sphi %s566_s12, %s715_s12   ;;  %s131_s18 = int_to_ptr.hbm [resolvable:$true] %s130_s18 }
   0x7   : > { %p337_p0 = scmp.ge.s32.totalorder %s541_s15, 1  ;;  %p41_p1 = scmp.eq.s32.totalorder %s590_s19, 0 }
   0x8   : > { %p119_p2 = scmp.lt.s32.totalorder %s541_s15, 3  ;;  %s543_s21 = smov [#allocation5]  }
   0x9   : > { %s132_s22 = sshll.u32 %s543_s21, 4  ;;  %s544_s23 = smov 128   ;;  %s133_s22 = int_to_ptr.vmem [resolvable:$true] %s132_s22 }
   0xa   : > { %p595_p3 = pnand %p337_p0, %p119_p2  ;;  %s545_s24 = smov 8  }
   0xb   : > { %s336_s25 = sadd.s32 4294967294, %s541_s15   ;;  %s606_s26 = sadd.s32 1, %s541_s15  }
   0xc   : > { %p359_p4 = pneg %p595_p3  ;;  %s27_s27 = sadd.s32 1, %s537_s14 }
   0xd   : > { %s24_s28 = ssub.s32 %s541_s15, %s606_s26  ;;  %p34_p7 = scmp.ne.s32.totalorder %s537_s14, %s533_s13 }
   0xe   : > { %p360_p6 = pnand %p359_p4, %p41_p1  ;;  %p25_p8 = scmp.eq.s32.totalorder %s24_s28, 0 }
   0xf   : > { %p35_p9 = scmp.eq.s32.totalorder %s541_s15, 0  ;;  %p40_p10 = scmp.ne.s32.totalorder %s533_s13, %s529_s12 }
  0x10   : > { %362 = dma.hbm_to_vmem [thread:$0]  (!%p360_p6), %s131_s18, 512, %s133_s22, [#allocation6], %s544_s23, %s544_s23, %s545_s24  }
  0x11   : > { %p106_p11 = scmp.eq.s32.totalorder %s590_s19, 1  ;;  %p622_p12 = por %p41_p1, %p40_p10 }
  0x12   : > { %s618_s29 = scalar_select %p25_p8, %s537_s14, %s27_s27  }
  0x13   : > { %p626_p13 = por %p106_p11, %p34_p7  ;;  %p112_p0 = scmp.eq.s32.totalorder %s336_s25, 1 }
  0x14   : > { %p36_p2 = por %p35_p9, %p34_p7  ;;  %s149_s5 = sand.u32 1, %s537_s14  }
  0x15   : > { %p631_p4 = por %p112_p0, %p40_p10  ;;  %p372_p6 = scmp.lt.s32.totalorder %s541_s15, 2 }
  0x16   : > { %s340_s7 = sshll.u32 %s149_s5, 3  ;;  %s341_s8 = sshll.u32 %s541_s15, 3 }
  0x17   : > { %s157_s11 = scalar_lea.hbm %s705_s0, %s341_s8  ;;  %s153_s17 = scalar_lea.vmem [#allocation2], %s340_s7 }
  0x18   : > { %s159_s16 = sshll.u32 %s157_s11, 4  ;;  %s161_s18 = sshll.u32 %s153_s17, 4  ;;  %s160_s16 = int_to_ptr.hbm [resolvable:$true] %s159_s16  ;;  %s162_s18 = int_to_ptr.vmem [resolvable:$true] %s161_s18 }
  0x19   : > { %p640_p8 = pnand %p372_p6, %p36_p2  ;;  %s150_s22 = scalar_lea.sflag [#allocation3], %s149_s5 }
  0x1a   : > { %s441_s23 = sshra.s32 %s160_s16, 4  ;;  %s448_s28 = scalar_lea.hbm %s705_s0, 16  ;;  %s442_s23 = int_to_ptr.hbm [resolvable:$true] %s441_s23 }
  0x1b   : > { %s443_s24 = scalar_lea.hbm %s442_s23, 8  ;;  %p445_p9 = pneg %p640_p8 }
  0x1c   : > { %p444_p7 = scmp.ne.s32.totalorder %s442_s23, %s443_s24  ;;  %p449_p0 = scmp.lt.s32.totalorder %s442_s23, %s705_s0 }
  0x1d   : > { %p450_p2 = scmp.lt.s32.totalorder %s448_s28, %s443_s24 }
  0x1e   : > { %p446_p10 = pnand %p445_p9, %p444_p7 }
  0x1f   : > { %p451_p6 = por %p450_p2, %p449_p0 }
  0x20   : > { %p447_p11 = pneg %p446_p10 }
  0x22   : > { %p452_p5 = pnand %p451_p6, %p447_p11 }
  0x24   : > { %455 = shalt.err (!%p452_p5)
}
  0x25   : > { %366 = dma.hbm_to_vmem [thread:$0]  (!%p640_p8), %s160_s16, 128, %s162_s18, %s150_s22  }
  0x26   : > { %170 = sbr.rel (%p595_p3) target bundleno = 185 (0xb9), region = 32  ;;  %s657_s5 = sand.u32 (!%p595_p3), 1, %s533_s13  }
  0x27   : > { %s343_s9 = sshll.u32 (!%p595_p3), %s657_s5, 3  ;;  %s173_s10 = scalar_lea.sflag (!%p595_p3), [#allocation3], %s657_s5 }
  0x28   : > { %s176_s11 = scalar_lea.vmem (!%p595_p3), [#allocation2], %s343_s9 }
  0x2b   : > { %516 = dma.done.wait (%p622_p12), %s173_s10, 128  }
  0x2c   : > { %518 = vsyncadd (%p622_p12), %s173_s10, 4294967168 }
  0x2d   : > { %520 = dma.done.wait (%p41_p1), [#allocation6], 512  }
  0x2e   : > { %522 = vsyncadd (%p41_p1), [#allocation6], 4294966784  ;;  %v209_v0 = vld [vmem:[#allocation5 + $0x18] sm:$0xff]  ;;  %v208_v1 = vld [vmem:[#allocation5 + $0x10] sm:$0xff]  ;;  %vm214_vm0 = vcmask 261120   ;;  %s348_s20 = sshll.u32 %s590_s19, 3 }
  0x2f   : > { %230 = vmatpush.msra.mxu0 %v209_v0  ;;  %v207_v2 = vld [vmem:[#allocation5 + $0x8] sm:$0xff]  ;;  %v206_v3 = vld [vmem:[#allocation5] sm:$0xff]  ;;  %v205_v4 = vld [vmem:[%s176_s11] sm:$0xff]  ;;  %s251_s17 = scalar_lea.hbm %s708_s3, %s348_s20  ;;  %s204_s22 = scalar_lea.vmem [#allocation7], %s343_s9  ;;  %vm238_vm1 = vcmask 785408  }
  0x30   : > { %v410_v5 = vld [vmem:[%s707_s2] ss:$0 sm:$0xff]  ;;  %s253_s23 = sshll.u32 %s204_s22, 4  ;;  %s255_s24 = sshll.u32 %s251_s17, 4  ;;  %s254_s23 = int_to_ptr.vmem [resolvable:$true] %s253_s23  ;;  %s256_s24 = int_to_ptr.hbm [resolvable:$true] %s255_s24 }
  0x31   : > { %231 = vmatpush.msra.mxu0 %v208_v1  ;;  %s241_s25 = scalar_lea.sflag [#allocation4], %s657_s5  ;;  %s485_s19 = sshra.s32 %s256_s24, 4  ;;  %s486_s19 = int_to_ptr.hbm [resolvable:$true] %s485_s19 }
  0x32   : > { %s487_s27 = scalar_lea.hbm %s486_s19, 8  ;;  %s491_s8 = scalar_lea.hbm %s708_s3, 16 }
  0x33   : > { %232 = vmatpush.msra.mxu0 %v207_v2  ;;  %p488_p1 = scmp.ne.s32.totalorder %s486_s19, %s487_s27  ;;  %p492_p12 = scmp.lt.s32.totalorder %s486_s19, %s708_s3 }
  0x34   : > { %p493_p8 = scmp.lt.s32.totalorder %s491_s8, %s487_s27 }
  0x35   : > { %233 = vmatpush.msra.mxu0 %v206_v3  ;;  %p489_p3 = pnand %p488_p1, %p626_p13 }
  0x36   : > { %346 = vmatmul.msk.f32.vlgmr.msra.gmra.mxu0 %vm214_vm0, %v205_v4  ;;  %p494_p7 = por %p493_p8, %p492_p12 }
  0x37   : > { %p490_p5 = pneg %p489_p3 }
  0x39   : > { %p495_p9 = pnand %p494_p7, %p490_p5 }
  0xb3   : > { %v235_v6 = vpop.f32.mrf.mxu0 }
  0xb4   : > { %v236_v7 = vadd.f32 %v410_v5, %v235_v6 }
  0xb6   : > { %239 = vst.msk [vmem:[%s204_s22] sm:$0xff] %vm238_vm1, %v236_v7 }
  0xb7   : > { %498 = shalt.err (!%p495_p9)
}
  0xb8   : > { %357 = dma.vmem_to_hbm [thread:$0]  (%p626_p13), %s254_s23, 128, %s256_s24, %s241_s25  }
  0xb9 PF: > { %s267_s5 = sand.u32 1, %s529_s12   ;;  %p714_p10 = scmp.ge.s32.totalorder %s541_s15, 2 }
  0xba   : > { %s268_s11 = scalar_lea.sflag [#allocation4], %s267_s5 }
  0xbb   : > { %p368_p11 = pnand %p714_p10, %p631_p4 }
  0xbd   : > { %p369_p0 = pneg %p368_p11 }
  0xbf   : > { %524 = dma.done.wait (%p369_p0), %s268_s11, 128  }
  0xc0   : > { %526 = vsyncadd (%p369_p0), %s268_s11, 4294967168  ;;  %p17_p2 = scmp.ge.s32.totalorder %s606_s26, 4   ;;  %s715_s12 = smov %s533_s13 }
  0xc1   : > { %s716_s13 = smov %s537_s14  ;;  %s717_s14 = smov %s618_s29 }
  0xc2   : > { %s718_s15 = smov %s606_s26  ;;  %19 = sbr.rel (!%p17_p2) target bundleno = 6 (0x6), region = 81 }
  0xc7   :  { %274 = vsyncpa [#allocation3], 1 }
  0xc8   :  { %276 = vsyncpa [#allocation3 + $0x1], 1 }
  0xc9   :  { %277 = vsyncpa [#allocation6], 1 }
  0xca   :  { %278 = vsyncpa [#allocation4], 1 }
  0xcb   :  { %280 = vsyncpa [#allocation4 + $0x1], 1 }

// kernel: tpu_custom_call.1
= control target key start
LH: loop header
LB: loop body
LE: loop exit
PB: predicated region body
PF: predicated region fallthrough
CT: control target
= control target key end

     0   :  { %8 = vsyncpa [#allocation3], 0  ;;  %s705_s0 = inlined_call_operand.hbm [shape: f32[16,32], index: 0, kind: input, shape index: {}]   ;;  %s706_s1 = inlined_call_operand.hbm [shape: f32[32,96], index: 1, kind: input, shape index: {}]   ;;  %s707_s2 = inlined_call_operand.vmem [shape: f32[1,96], index: 2, kind: input, shape index: {}]   ;;  %s708_s3 = inlined_call_operand.hbm [shape: f32[16,96], index: 3, kind: output, shape index: {}]  }
   0x1   :  { %10 = vsyncpa [#allocation3 + $0x1], 0 }
   0x2   :  { %11 = vsyncpa [#allocation6], 0 }
   0x3   :  { %12 = vsyncpa [#allocation4], 0 }
   0x4   :  { %14 = vsyncpa [#allocation4 + $0x1], 0  ;;  %s566_s12 = smov 0   ;;  %s568_s13 = smov 0  }
   0x5   :  { %s570_s14 = smov 0   ;;  %s572_s15 = smov 0  }
   0x6 LB: > { %s130_s18 = sshll.u32 %s706_s1, 4  ;;  %s590_s19 = sadd.s32 4294967295, %s541_s15   ;;  %s541_s15 = sphi %s572_s15, %s718_s15   ;;  %s537_s14 = sphi %s570_s14, %s717_s14   ;;  %s533_s13 = sphi %s568_s13, %s716_s13   ;;  %s529_s12 = sphi %s566_s12, %s715_s12   ;;  %s131_s18 = int_to_ptr.hbm [resolvable:$true] %s130_s18 }
   0x7   : > { %p337_p0 = scmp.ge.s32.totalorder %s541_s15, 1  ;;  %p41_p1 = scmp.eq.s32.totalorder %s590_s19, 0 }
   0x8   : > { %p119_p2 = scmp.lt.s32.totalorder %s541_s15, 3  ;;  %s543_s21 = smov [#allocation5]  }
   0x9   : > { %s132_s22 = sshll.u32 %s543_s21, 4  ;;  %s544_s23 = smov 128   ;;  %s133_s22 = int_to_ptr.vmem [resolvable:$true] %s132_s22 }
   0xa   : > { %p595_p3 = pnand %p337_p0, %p119_p2  ;;  %s545_s24 = smov 8  }
   0xb   : > { %s336_s25 = sadd.s32 4294967294, %s541_s15   ;;  %s606_s26 = sadd.s32 1, %s541_s15  }
   0xc   : > { %p359_p4 = pneg %p595_p3  ;;  %s27_s27 = sadd.s32 1, %s537_s14 }
   0xd   : > { %s24_s28 = ssub.s32 %s541_s15, %s606_s26  ;;  %p34_p7 = scmp.ne.s32.totalorder %s537_s14, %s533_s13 }
   0xe   : > { %p360_p6 = pnand %p359_p4, %p41_p1  ;;  %p25_p8 = scmp.eq.s32.totalorder %s24_s28, 0 }
   0xf   : > { %p35_p9 = scmp.eq.s32.totalorder %s541_s15, 0  ;;  %p40_p10 = scmp.ne.s32.totalorder %s533_s13, %s529_s12 }
  0x10   : > { %362 = dma.hbm_to_vmem [thread:$0]  (!%p360_p6), %s131_s18, 512, %s133_s22, [#allocation6], %s544_s23, %s544_s23, %s545_s24  }
  0x11   : > { %p106_p11 = scmp.eq.s32.totalorder %s590_s19, 1  ;;  %p622_p12 = por %p41_p1, %p40_p10 }
  0x12   : > { %s618_s29 = scalar_select %p25_p8, %s537_s14, %s27_s27  }
  0x13   : > { %p626_p13 = por %p106_p11, %p34_p7  ;;  %p112_p0 = scmp.eq.s32.totalorder %s336_s25, 1 }
  0x14   : > { %p36_p2 = por %p35_p9, %p34_p7  ;;  %s149_s5 = sand.u32 1, %s537_s14  }
  0x15   : > { %p631_p4 = por %p112_p0, %p40_p10  ;;  %p372_p6 = scmp.lt.s32.totalorder %s541_s15, 2 }
  0x16   : > { %s340_s7 = sshll.u32 %s149_s5, 3  ;;  %s341_s8 = sshll.u32 %s541_s15, 3 }
  0x17   : > { %s157_s11 = scalar_lea.hbm %s705_s0, %s341_s8  ;;  %s153_s17 = scalar_lea.vmem [#allocation2], %s340_s7 }
  0x18   : > { %s159_s16 = sshll.u32 %s157_s11, 4  ;;  %s161_s18 = sshll.u32 %s153_s17, 4  ;;  %s160_s16 = int_to_ptr.hbm [resolvable:$true] %s159_s16  ;;  %s162_s18 = int_to_ptr.vmem [resolvable:$true] %s161_s18 }
  0x19   : > { %p640_p8 = pnand %p372_p6, %p36_p2  ;;  %s150_s22 = scalar_lea.sflag [#allocation3], %s149_s5 }
  0x1a   : > { %s441_s23 = sshra.s32 %s160_s16, 4  ;;  %s448_s28 = scalar_lea.hbm %s705_s0, 16  ;;  %s442_s23 = int_to_ptr.hbm [resolvable:$true] %s441_s23 }
  0x1b   : > { %s443_s24 = scalar_lea.hbm %s442_s23, 8  ;;  %p445_p9 = pneg %p640_p8 }
  0x1c   : > { %p444_p7 = scmp.ne.s32.totalorder %s442_s23, %s443_s24  ;;  %p449_p0 = scmp.lt.s32.totalorder %s442_s23, %s705_s0 }
  0x1d   : > { %p450_p2 = scmp.lt.s32.totalorder %s448_s28, %s443_s24 }
  0x1e   : > { %p446_p10 = pnand %p445_p9, %p444_p7 }
  0x1f   : > { %p451_p6 = por %p450_p2, %p449_p0 }
  0x20   : > { %p447_p11 = pneg %p446_p10 }
  0x22   : > { %p452_p5 = pnand %p451_p6, %p447_p11 }
  0x24   : > { %455 = shalt.err (!%p452_p5)
}
  0x25   : > { %366 = dma.hbm_to_vmem [thread:$0]  (!%p640_p8), %s160_s16, 128, %s162_s18, %s150_s22  }
  0x26   : > { %170 = sbr.rel (%p595_p3) target bundleno = 185 (0xb9), region = 32  ;;  %s657_s5 = sand.u32 (!%p595_p3), 1, %s533_s13  }
  0x27   : > { %s343_s9 = sshll.u32 (!%p595_p3), %s657_s5, 3  ;;  %s173_s10 = scalar_lea.sflag (!%p595_p3), [#allocation3], %s657_s5 }
  0x28   : > { %s176_s11 = scalar_lea.vmem (!%p595_p3), [#allocation2], %s343_s9 }
  0x2b   : > { %516 = dma.done.wait (%p622_p12), %s173_s10, 128  }
  0x2c   : > { %518 = vsyncadd (%p622_p12), %s173_s10, 4294967168 }
  0x2d   : > { %520 = dma.done.wait (%p41_p1), [#allocation6], 512  }
  0x2e   : > { %522 = vsyncadd (%p41_p1), [#allocation6], 4294966784  ;;  %v209_v0 = vld [vmem:[#allocation5 + $0x18] sm:$0xff]  ;;  %v208_v1 = vld [vmem:[#allocation5 + $0x10] sm:$0xff]  ;;  %vm214_vm0 = vcmask 261120   ;;  %s348_s20 = sshll.u32 %s590_s19, 3 }
  0x2f   : > { %230 = vmatpush.msra.mxu0 %v209_v0  ;;  %v207_v2 = vld [vmem:[#allocation5 + $0x8] sm:$0xff]  ;;  %v206_v3 = vld [vmem:[#allocation5] sm:$0xff]  ;;  %v205_v4 = vld [vmem:[%s176_s11] sm:$0xff]  ;;  %s251_s17 = scalar_lea.hbm %s708_s3, %s348_s20  ;;  %s204_s22 = scalar_lea.vmem [#allocation7], %s343_s9  ;;  %vm238_vm1 = vcmask 785408  }
  0x30   : > { %v410_v5 = vld [vmem:[%s707_s2] ss:$0 sm:$0xff]  ;;  %s253_s23 = sshll.u32 %s204_s22, 4  ;;  %s255_s24 = sshll.u32 %s251_s17, 4  ;;  %s254_s23 = int_to_ptr.vmem [resolvable:$true] %s253_s23  ;;  %s256_s24 = int_to_ptr.hbm [resolvable:$true] %s255_s24 }
  0x31   : > { %231 = vmatpush.msra.mxu0 %v208_v1  ;;  %s241_s25 = scalar_lea.sflag [#allocation4], %s657_s5  ;;  %s485_s19 = sshra.s32 %s256_s24, 4  ;;  %s486_s19 = int_to_ptr.hbm [resolvable:$true] %s485_s19 }
  0x32   : > { %s487_s27 = scalar_lea.hbm %s486_s19, 8  ;;  %s491_s8 = scalar_lea.hbm %s708_s3, 16 }
  0x33   : > { %232 = vmatpush.msra.mxu0 %v207_v2  ;;  %p488_p1 = scmp.ne.s32.totalorder %s486_s19, %s487_s27  ;;  %p492_p12 = scmp.lt.s32.totalorder %s486_s19, %s708_s3 }
  0x34   : > { %p493_p8 = scmp.lt.s32.totalorder %s491_s8, %s487_s27 }
  0x35   : > { %233 = vmatpush.msra.mxu0 %v206_v3  ;;  %p489_p3 = pnand %p488_p1, %p626_p13 }
  0x36   : > { %346 = vmatmul.msk.f32.vlgmr.msra.gmra.mxu0 %vm214_vm0, %v205_v4  ;;  %p494_p7 = por %p493_p8, %p492_p12 }
  0x37   : > { %p490_p5 = pneg %p489_p3 }
  0x39   : > { %p495_p9 = pnand %p494_p7, %p490_p5 }
  0xb3   : > { %v235_v6 = vpop.f32.mrf.mxu0 }
  0xb4   : > { %v236_v7 = vadd.f32 %v410_v5, %v235_v6 }
  0xb6   : > { %239 = vst.msk [vmem:[%s204_s22] sm:$0xff] %vm238_vm1, %v236_v7 }
  0xb7   : > { %498 = shalt.err (!%p495_p9)
}
  0xb8   : > { %357 = dma.vmem_to_hbm [thread:$0]  (%p626_p13), %s254_s23, 128, %s256_s24, %s241_s25  }
  0xb9 PF: > { %s267_s5 = sand.u32 1, %s529_s12   ;;  %p714_p10 = scmp.ge.s32.totalorder %s541_s15, 2 }
  0xba   : > { %s268_s11 = scalar_lea.sflag [#allocation4], %s267_s5 }
  0xbb   : > { %p368_p11 = pnand %p714_p10, %p631_p4 }
  0xbd   : > { %p369_p0 = pneg %p368_p11 }
  0xbf   : > { %524 = dma.done.wait (%p369_p0), %s268_s11, 128  }
  0xc0   : > { %526 = vsyncadd (%p369_p0), %s268_s11, 4294967168  ;;  %p17_p2 = scmp.ge.s32.totalorder %s606_s26, 4   ;;  %s715_s12 = smov %s533_s13 }
  0xc1   : > { %s716_s13 = smov %s537_s14  ;;  %s717_s14 = smov %s618_s29 }
  0xc2   : > { %s718_s15 = smov %s606_s26  ;;  %19 = sbr.rel (!%p17_p2) target bundleno = 6 (0x6), region = 81 }
  0xc7   :  { %274 = vsyncpa [#allocation3], 1 }
  0xc8   :  { %276 = vsyncpa [#allocation3 + $0x1], 1 }
  0xc9   :  { %277 = vsyncpa [#allocation6], 1 }
  0xca   :  { %278 = vsyncpa [#allocation4], 1 }
  0xcb   :  { %280 = vsyncpa [#allocation4 + $0x1], 1 }

</bundles_post_ra>
